<compile_context>
chip_gen: v5e
topology: v5e:2x2
jax: 0.10.0
libtpu: 0.0.40
codegen_flags: <defaults>
</compile_context>

<pallas_src>
import functools

import jax
import jax.numpy as jnp
from jax.experimental import pallas as pl
from jax.experimental.pallas import tpu as pltpu


_COMPUTE_DTYPE = jnp.bfloat16          # streamed operands / intermediates
_Y_RESIDENT_BYTES = 8 * 1024 * 1024    # keep Y VMEM-resident below this size


# ----------------------------- Pallas kernels ------------------------------ #
def _transform_kernel(x_ref, w_ref, b_ref, o_ref, *, relu):
    """o = x @ W + b (optionally ReLU); f32 MXU accumulation, per row-tile."""
    r = jnp.dot(x_ref[...], w_ref[...], preferred_element_type=jnp.float32)
    r = r + b_ref[...]
    if relu:
        r = jnp.maximum(r, 0.0)
    o_ref[...] = r.astype(o_ref.dtype)


def _propagate_kernel(a_ref, y_ref, b_ref, o_ref, acc_ref, *, relu, tk,
                      y_resident):
    """o[i] = sum_k A[i,k] @ Y[k] + b (optionally ReLU); f32 VMEM accumulator."""
    k = pl.program_id(2)

    @pl.when(k == 0)
    def _():
        acc_ref[...] = jnp.zeros_like(acc_ref)

    if y_resident:
        # Y stays in VMEM for the whole graph; slice the current k-chunk.
        y = y_ref[pl.ds(pl.multiple_of(k * tk, tk), tk), :]
    else:
        y = y_ref[...]
    acc_ref[...] += jnp.dot(a_ref[...], y, preferred_element_type=jnp.float32)

    @pl.when(k == pl.num_programs(2) - 1)
    def _():
        r = acc_ref[...] + b_ref[...]
        if relu:
            r = jnp.maximum(r, 0.0)
        o_ref[...] = r.astype(o_ref.dtype)


# ---------------------------- Pallas wrappers ------------------------------ #
def _transform(x, w, b, *, relu, out_dtype, tile):
    """x: [G, Np, Fin], w: [Fin, Fout], b: [1, Fout] -> relu?(x @ w + b)."""
    g, n, f_in = x.shape
    f_out = w.shape[1]
    tm = min(tile, n)
    grid = (g, n // tm)
    out_item = jnp.dtype(out_dtype).itemsize
    cost = pl.CostEstimate(
        flops=2 * g * n * f_in * f_out,
        transcendentals=0,
        bytes_accessed=(x.size * x.dtype.itemsize + w.size * w.dtype.itemsize
                        + b.size * b.dtype.itemsize + g * n * f_out * out_item),
    )
    kernel = functools.partial(_transform_kernel, relu=relu)
    return pl.pallas_call(
        kernel,
        out_shape=jax.ShapeDtypeStruct((g, n, f_out), out_dtype),
        grid_spec=pltpu.PrefetchScalarGridSpec(
            num_scalar_prefetch=0,
            grid=grid,
            in_specs=[
                pl.BlockSpec((None, tm, f_in), lambda gi, i: (gi, i, 0)),
                pl.BlockSpec((f_in, f_out), lambda gi, i: (0, 0)),
                pl.BlockSpec((1, f_out), lambda gi, i: (0, 0)),
            ],
            out_specs=pl.BlockSpec((None, tm, f_out), lambda gi, i: (gi, i, 0)),
        ),
        compiler_params=pltpu.CompilerParams(
            dimension_semantics=("parallel", "parallel"),
            vmem_limit_bytes=32 * 1024 * 1024,
        ),
        cost_estimate=cost,
    )(x, w, b)


def _propagate(a, y, b, *, relu, out_dtype, tm, tk):
    """a: [G, Np, Np], y: [G, Np, F], b: [1, F] -> relu?(A @ y + b)."""
    g, n, _ = a.shape
    f = y.shape[2]
    grid = (g, n // tm, n // tk)
    out_item = jnp.dtype(out_dtype).itemsize
    # Keep Y VMEM-resident per graph when it fits (removes N/tm re-reads).
    y_resident = (n * f * y.dtype.itemsize) <= _Y_RESIDENT_BYTES
    y_reads = 1 if y_resident else (n // tm)
    cost = pl.CostEstimate(
        flops=2 * g * n * n * f,
        transcendentals=0,
        bytes_accessed=(g * n * n * a.dtype.itemsize
                        + y_reads * g * n * f * y.dtype.itemsize
                        + g * n * f * out_item + b.size * b.dtype.itemsize),
    )
    if y_resident:
        y_spec = pl.BlockSpec((None, n, f), lambda gi, i, k: (gi, 0, 0))
    else:
        y_spec = pl.BlockSpec((None, tk, f), lambda gi, i, k: (gi, k, 0))
    kernel = functools.partial(
        _propagate_kernel, relu=relu, tk=tk, y_resident=y_resident)
    return pl.pallas_call(
        kernel,
        out_shape=jax.ShapeDtypeStruct((g, n, f), out_dtype),
        grid_spec=pltpu.PrefetchScalarGridSpec(
            num_scalar_prefetch=0,
            grid=grid,
            in_specs=[
                pl.BlockSpec((None, tm, tk), lambda gi, i, k: (gi, i, k)),
                y_spec,
                pl.BlockSpec((1, f), lambda gi, i, k: (0, 0)),
            ],
            out_specs=pl.BlockSpec((None, tm, f), lambda gi, i, k: (gi, i, 0)),
            scratch_shapes=[pltpu.VMEM((tm, f), jnp.float32)],
        ),
        compiler_params=pltpu.CompilerParams(
            dimension_semantics=("parallel", "parallel", "arbitrary"),
            # Capped so tm=512 A-tiles + a resident Y fit v7x's 64 MiB VMEM;
            # also lifts v5e's 16 MiB scoped default.
            vmem_limit_bytes=48 * 1024 * 1024,
        ),
        cost_estimate=cost,
    )(a, y, b)


def _gcn_layer(a, x, w, b, *, relu, out_dtype, tm, tk, tile_t):
    """One GCNConv layer: A_hat @ (x @ W) + b  ==  (A_hat @ x) @ W + b.

    The O(N^2) propagation runs at the NARROWER of the two padded feature
    widths so the dominant A-streaming matmul moves as few bytes/FLOPs as
    possible. The bias (and ReLU) is always applied by the LAST stage so the
    result is mathematically identical in either order.
    """
    f_in = x.shape[2]
    f_out = w.shape[1]
    if f_in < f_out:
        # Propagate first at the narrow input width: (A @ X) @ W + b.
        zeros_in = jnp.zeros((1, f_in), jnp.float32)
        ax = _propagate(a, x, zeros_in, relu=False,
                        out_dtype=_COMPUTE_DTYPE, tm=tm, tk=tk)
        return _transform(ax, w, b, relu=relu, out_dtype=out_dtype, tile=tile_t)
    # Transform first: A @ (X @ W) + b.
    zeros_out = jnp.zeros((1, f_out), jnp.float32)
    xw = _transform(x, w, zeros_out, relu=False,
                    out_dtype=_COMPUTE_DTYPE, tile=tile_t)
    return _propagate(a, xw, b, relu=relu, out_dtype=out_dtype, tm=tm, tk=tk)


def gcn_two_layer_batched(a, x, w1, b1, w2, b2, *, tm, tk, tile_t):
    """Batched 2-layer GCN on padded, lane-dense operands (all Pallas)."""
    h = _gcn_layer(a, x, w1, b1, relu=True, out_dtype=_COMPUTE_DTYPE,
                   tm=tm, tk=tk, tile_t=tile_t)
    return _gcn_layer(a, h, w2, b2, relu=False, out_dtype=jnp.float32,
                      tm=tm, tk=tk, tile_t=tile_t)


# ------------------------------- JAX glue ----------------------------------- #
def normalized_adjacency(edge_index, edge_weight, num_nodes):
    """Dense D^{-1/2}(A+I)D^{-1/2} matching torch_geometric's gcn_norm.

    edge_index[0] = source nodes, edge_index[1] = target nodes; messages flow
    source -> target, so A_hat[target, source] = norm.
    """
    src = edge_index[0]
    dst = edge_index[1]
    loop = jnp.arange(num_nodes, dtype=src.dtype)
    src = jnp.concatenate([src, loop])
    dst = jnp.concatenate([dst, loop])
    w = jnp.concatenate([edge_weight, jnp.ones((num_nodes,), edge_weight.dtype)])
    deg = jnp.zeros((num_nodes,), w.dtype).at[dst].add(w)
    dinv = jnp.where(deg > 0, jax.lax.rsqrt(deg), 0.0)
    norm = dinv[src] * w * dinv[dst]
    a_hat = jnp.zeros((num_nodes, num_nodes), w.dtype).at[dst, src].add(norm)
    return a_hat


def _round_up(n, m):
    return ((n + m - 1) // m) * m


def _pad_to(x, shape):
    pads = [(0, s - d) for d, s in zip(x.shape, shape)]
    return jnp.pad(x, pads)


def gcn_forward(graph_lst, params):
    """Equivalent of GCN.forward() with use_raw_emb=False (all graphs batched)."""
    w1, b1, w2, b2 = params
    f_in, hidden = w1.shape
    out_dim = w2.shape[1]

    # Lane-dense padded feature dims (multiples of 128).
    f_in_p = _round_up(f_in, 128)
    hid_p = _round_up(hidden, 128)
    out_p = _round_up(out_dim, 128)

    # Node padding + propagation tile choice: large (512 x 256) A tiles when
    # the graph is big enough (~85% of HBM roofline vs ~63% at 256), single
    # tile when small.
    n_list = [x.shape[0] for (x, _, _) in graph_lst]
    n_max = max(n_list)
    if n_max <= 128:
        n_pad, tm, tk = 128, 128, 128
    elif n_max <= 256:
        n_pad, tm, tk = 256, 256, 128
    else:
        n_pad = _round_up(n_max, 512)
        tm, tk = 512, 256
    tile_t = min(256, n_pad)

    # Build and pad per-graph operands (bf16 for the streamed operands), then
    # stack into a batch. Padded rows/cols of A_hat and x are zero.
    a_stack, x_stack = [], []
    for (x, edge_index, edge_weight) in graph_lst:
        n = x.shape[0]
        a_hat = normalized_adjacency(edge_index, edge_weight, n)
        a_stack.append(_pad_to(a_hat.astype(jnp.float32),
                               (n_pad, n_pad)).astype(_COMPUTE_DTYPE))
        x_stack.append(_pad_to(x.astype(jnp.float32),
                               (n_pad, f_in_p)).astype(_COMPUTE_DTYPE))
    a_b = jnp.stack(a_stack)          # [G, Np, Np]  bf16
    x_b = jnp.stack(x_stack)          # [G, Np, Fp]  bf16

    # Zero-padded, lane-dense weights (bf16) / biases (f32 epilogue).
    w1p = _pad_to(w1.astype(jnp.float32), (f_in_p, hid_p)).astype(_COMPUTE_DTYPE)
    b1p = _pad_to(b1.astype(jnp.float32).reshape(1, -1), (1, hid_p))
    w2p = _pad_to(w2.astype(jnp.float32), (hid_p, out_p)).astype(_COMPUTE_DTYPE)
    b2p = _pad_to(b2.astype(jnp.float32).reshape(1, -1), (1, out_p))

    o_b = gcn_two_layer_batched(a_b, x_b, w1p, b1p, w2p, b2p,
                                tm=tm, tk=tk, tile_t=tile_t)

    # Un-pad back to per-graph outputs.
    return [o_b[g, :n, :out_dim] for g, n in enumerate(n_list)]


def _reference(graph_lst, params):
    """Plain-JAX f32 reference for sanity check."""
    w1, b1, w2, b2 = params
    outs = []
    for (x, edge_index, edge_weight) in graph_lst:
        n = x.shape[0]
        a = normalized_adjacency(edge_index, edge_weight, n)
        h = jnp.maximum(a @ (x @ w1) + b1, 0.0)
        outs.append(a @ (h @ w2) + b2)
    return outs


# --------------------------------- main ------------------------------------- #
if __name__ == "__main__":
    # Small, forward-consistent shapes. hidden_dim=160 pads to 256 so BOTH
    # propagation orders ((A@X)@W1 for layer 1, A@(H@W2) for layer 2) are
    # exercised at runtime.
    num_features = 8
    hidden_dim = 160
    out_dim = 16
    num_nodes = 16
    num_edges = 40
    num_graphs = 2

    key = jax.random.PRNGKey(0)
    k_w1, k_w2, k_graphs = jax.random.split(key, 3)

    # Deterministic Glorot-uniform-ish weights, zero biases (GCNConv bias=True).
    def glorot(k, fan_in, fan_out):
        lim = jnp.sqrt(6.0 / (fan_in + fan_out))
        return jax.random.uniform(
            k, (fan_in, fan_out), jnp.float32, minval=-lim, maxval=lim
        )

    w1 = glorot(k_w1, num_features, hidden_dim)
    b1 = jnp.zeros((hidden_dim,), jnp.float32)
    w2 = glorot(k_w2, hidden_dim, out_dim)
    b2 = jnp.zeros((out_dim,), jnp.float32)
    params = (w1, b1, w2, b2)

    # Build graph_lst: each graph = (x, edge_index, edge_attr)
    graph_lst = []
    gkeys = jax.random.split(k_graphs, num_graphs)
    for gk in gkeys:
        kx, ke, kw = jax.random.split(gk, 3)
        x = jax.random.normal(kx, (num_nodes, num_features), jnp.float32)
        edge_index = jax.random.randint(
            ke, (2, num_edges), 0, num_nodes, dtype=jnp.int32
        )
        edge_attr = jax.random.uniform(
            kw, (num_edges,), jnp.float32, minval=0.1, maxval=1.0
        )
        graph_lst.append((x, edge_index, edge_attr))

    # Run Pallas-backed forward
    res_g = gcn_forward(graph_lst, params)
    res_g = [jax.block_until_ready(o) for o in res_g]

    # Sanity check against plain-JAX f32 reference (bf16 compute -> loose tol).
    ref_g = _reference(graph_lst, params)
    for o, r in zip(res_g, ref_g):
        assert o.shape == (num_nodes, out_dim)
        assert jnp.allclose(o, r, atol=5e-2, rtol=5e-2)

    print("KERNEL_OK")
</pallas_src>

<mosaic_0001>
module attributes {stable_mosaic.version = 11 : i64} {
  func.func @_propagate_kernel(%arg0: i32, %arg1: i32, %arg2: i32, %arg3: memref<1x128x128xbf16, #tpu.memory_space<vmem>>, %arg4: memref<1x128x128xbf16, #tpu.memory_space<vmem>>, %arg5: memref<1x128xf32, #tpu.memory_space<vmem>>, %arg6: memref<1x128x128xbf16, #tpu.memory_space<vmem>>, %arg7: memref<128x128xf32, #tpu.memory_space<vmem>>) attributes {dimension_semantics = [#tpu.dimension_semantics<parallel>, #tpu.dimension_semantics<parallel>, #tpu.dimension_semantics<arbitrary>], iteration_bounds = array<i64: 2, 1, 1>, scalar_prefetch = 0 : i64, scratch_operands = 1 : i64, tpu.core_type = #tpu.core_type<tc>, window_params = [{transform_indices = @transform_0, window_bounds = array<i64: 1, 128, 128>}, {transform_indices = @transform_1, window_bounds = array<i64: 1, 128, 128>}, {pipeline_mode = #tpu.pipeline_mode<synchronous>, transform_indices = @transform_2, window_bounds = array<i64: 1, 128>}, {transform_indices = @transform_3, window_bounds = array<i64: 1, 128, 128>}]} {
    %c0_i32 = arith.constant 0 : i32
    %0 = arith.cmpi eq, %arg2, %c0_i32 : i32
    %1 = arith.extui %0 : i1 to i32
    %c0_i32_0 = arith.constant 0 : i32
    %2 = arith.cmpi ne, %1, %c0_i32_0 : i32
    scf.if %2 {
      %cst_11 = arith.constant 0.000000e+00 : f32
      %17 = vector.broadcast %cst_11 : f32 to vector<128x128xf32>
      %c0_12 = arith.constant 0 : index
      %c0_13 = arith.constant 0 : index
      %18 = vector.load %arg7[%c0_12, %c0_13] : memref<128x128xf32, #tpu.memory_space<vmem>>, vector<128x128xf32>
      tpu.vector_store %arg7[%c0_12, %c0_13], %17 {strides = array<i32>} : memref<128x128xf32, #tpu.memory_space<vmem>>, vector<128x128xf32>,
    } else {
    }
    %c128_i32 = arith.constant 128 : i32
    %3 = arith.muli %arg2, %c128_i32 : i32
    %4 = tpu.assume_multiple %3, 128 : i32
    %c0 = arith.constant 0 : index
    %5 = arith.index_cast %4 : i32 to index
    %c0_1 = arith.constant 0 : index
    %6 = vector.load %arg4[%c0, %5, %c0_1] : memref<1x128x128xbf16, #tpu.memory_space<vmem>>, vector<1x128x128xbf16>
    %7 = vector.shape_cast %6 : vector<1x128x128xbf16> to vector<128x128xbf16>
    %c0_2 = arith.constant 0 : index
    %c0_3 = arith.constant 0 : index
    %8 = vector.load %arg7[%c0_2, %c0_3] : memref<128x128xf32, #tpu.memory_space<vmem>>, vector<128x128xf32>
    %c0_4 = arith.constant 0 : index
    %c0_5 = arith.constant 0 : index
    %c0_6 = arith.constant 0 : index
    %9 = vector.load %arg3[%c0_4, %c0_5, %c0_6] : memref<1x128x128xbf16, #tpu.memory_space<vmem>>, vector<1x128x128xbf16>
    %10 = vector.shape_cast %9 : vector<1x128x128xbf16> to vector<128x128xbf16>
    %cst = arith.constant dense<0.000000e+00> : vector<128x128xf32>
    %11 = tpu.matmul %10, %7, %cst {dimension_numbers = #tpu.dot_dimension_numbers<[1], [0], [0], [1], [0, 0, 1, 1], [], []>} : vector<128x128xbf16>, vector<128x128xbf16>, vector<128x128xf32> -> vector<128x128xf32>
    %12 = arith.addf %8, %11 : vector<128x128xf32>
    %c0_7 = arith.constant 0 : index
    %c0_8 = arith.constant 0 : index
    %13 = vector.load %arg7[%c0_7, %c0_8] : memref<128x128xf32, #tpu.memory_space<vmem>>, vector<128x128xf32>
    tpu.vector_store %arg7[%c0_7, %c0_8], %12 {strides = array<i32>} : memref<128x128xf32, #tpu.memory_space<vmem>>, vector<128x128xf32>,
    %c0_i32_9 = arith.constant 0 : i32
    %14 = arith.cmpi eq, %arg2, %c0_i32_9 : i32
    %15 = arith.extui %14 : i1 to i32
    %c0_i32_10 = arith.constant 0 : i32
    %16 = arith.cmpi ne, %15, %c0_i32_10 : i32
    scf.if %16 {
      %c0_11 = arith.constant 0 : index
      %c0_12 = arith.constant 0 : index
      %17 = vector.load %arg7[%c0_11, %c0_12] : memref<128x128xf32, #tpu.memory_space<vmem>>, vector<128x128xf32>
      %c0_13 = arith.constant 0 : index
      %c0_14 = arith.constant 0 : index
      %18 = vector.load %arg5[%c0_13, %c0_14] : memref<1x128xf32, #tpu.memory_space<vmem>>, vector<1x128xf32>
      %19 = vector.broadcast %18 : vector<1x128xf32> to vector<128x128xf32>
      %20 = arith.addf %17, %19 : vector<128x128xf32>
      %21 = arith.truncf %20 : vector<128x128xf32> to vector<128x128xbf16>
      %c0_15 = arith.constant 0 : index
      %c0_16 = arith.constant 0 : index
      %c0_17 = arith.constant 0 : index
      %22 = vector.load %arg6[%c0_15, %c0_16, %c0_17] : memref<1x128x128xbf16, #tpu.memory_space<vmem>>, vector<1x128x128xbf16>
      %23 = vector.shape_cast %22 : vector<1x128x128xbf16> to vector<128x128xbf16>
      %24 = vector.shape_cast %21 : vector<128x128xbf16> to vector<1x128x128xbf16>
      tpu.vector_store %arg6[%c0_15, %c0_16, %c0_17], %24 {strides = array<i32>} : memref<1x128x128xbf16, #tpu.memory_space<vmem>>, vector<1x128x128xbf16>,
    } else {
    }
    return
  }
  func.func @transform_0(%arg0: i32, %arg1: i32, %arg2: i32) -> (i32, i32, i32) {
    %c0_i32 = arith.constant 0 : i32
    return %arg0, %arg1, %arg2 : i32, i32, i32
  }
  func.func @transform_1(%arg0: i32, %arg1: i32, %arg2: i32) -> (i32, i32, i32) {
    %c0_i32 = arith.constant 0 : i32
    %c0_i32_0 = arith.constant 0 : i32
    %c0_i32_1 = arith.constant 0 : i32
    return %arg0, %c0_i32, %c0_i32_0 : i32, i32, i32
  }
  func.func @transform_2(%arg0: i32, %arg1: i32, %arg2: i32) -> (i32, i32) {
    %c0_i32 = arith.constant 0 : i32
    %c0_i32_0 = arith.constant 0 : i32
    %c0_i32_1 = arith.constant 0 : i32
    return %c0_i32, %c0_i32_0 : i32, i32
  }
  func.func @transform_3(%arg0: i32, %arg1: i32, %arg2: i32) -> (i32, i32, i32) {
    %c0_i32 = arith.constant 0 : i32
    %c0_i32_0 = arith.constant 0 : i32
    return %arg0, %arg1, %c0_i32 : i32, i32, i32
  }
}

</mosaic_0001>

<bundles_post_ra>
// kernel: tpu_custom_call.1
= control target key start
LH: loop header
LB: loop body
LE: loop exit
PB: predicated region body
PF: predicated region fallthrough
CT: control target
= control target key end

     0   :  { %s1315_s0 = inlined_call_operand.hbm [shape: bf16[2,128,128], index: 0, kind: input, shape index: {}]   ;;  %s1316_s1 = inlined_call_operand.hbm [shape: bf16[2,128,128], index: 1, kind: input, shape index: {}]   ;;  %s1317_s2 = inlined_call_operand.vmem [shape: f32[1,128], index: 2, kind: input, shape index: {}]   ;;  %s1318_s3 = inlined_call_operand.hbm [shape: bf16[2,128,128], index: 3, kind: output, shape index: {}]  }
   0x1   :  { %1319 = sst [smem:[#allocation12_spill]] %s1315_s0 }
   0x2   :  { %8 = vsyncpa [#allocation4], 0 }
   0x3   :  { %10 = vsyncpa [#allocation4 + $0x1], 0 }
   0x4   :  { %11 = vsyncpa [#allocation7], 0 }
   0x5   :  { %13 = vsyncpa [#allocation7 + $0x1], 0 }
   0x6   :  { %14 = vsyncpa [#allocation5], 0 }
   0x7   :  { %16 = vsyncpa [#allocation5 + $0x1], 0  ;;  %s1135_s12 = smov 0   ;;  %s1137_s13 = smov 0  }
   0x8   :  { %s1139_s14 = smov 0   ;;  %s1141_s15 = smov 0  }
   0x9   :  { %s1143_s16 = smov 0   ;;  %s1145_s17 = smov 0  }
   0xa LB: > { %s718_s18 = sadd.s32 4294967295, %s1109_s17   ;;  %s719_s19 = sadd.s32 4294967294, %s1109_s17   ;;  %s1109_s17 = sphi %s1145_s17, %s22_s17   ;;  %s1105_s16 = sphi %s1143_s16, %s1330_s16   ;;  %s1101_s15 = sphi %s1141_s15, %s1329_s15   ;;  %s1097_s14 = sphi %s1139_s14, %s1328_s14   ;;  %s1093_s13 = sphi %s1137_s13, %s1327_s13   ;;  %s1089_s12 = sphi %s1135_s12, %s1326_s12  }
   0xb   : > { %s41_s20 = sadd.s32 1, %s1105_s16  ;;  %s52_s21 = sadd.s32 1, %s1097_s14 }
   0xc   : > { %p43_p0 = scmp.ge.s32.totalorder %s41_s20, 2  ;;  %p59_p1 = scmp.ne.s32.totalorder %s1097_s14, %s1093_s13 }
   0xd   : > { %p60_p2 = scmp.eq.s32.totalorder %s1109_s17, 0  ;;  %p65_p3 = scmp.ne.s32.totalorder %s1093_s13, %s1089_s12 }
   0xe   : > { %s1332_s20 = smov (%p43_p0, %s41_s20), 0  ;;  %p66_p5 = scmp.eq.s32.totalorder %s718_s18, 0 }
   0xf   : > { %p1176_p4 = por %p60_p2, %p59_p1  ;;  %s45_s23 = ssub.s32 %s1105_s16, %s1332_s20 }
  0x10   : > { %p138_p6 = scmp.eq.s32.totalorder %s718_s18, 1  ;;  %p50_p7 = scmp.eq.s32.totalorder %s45_s23, 0 }
  0x11   : > { %p1182_p8 = por %p66_p5, %p65_p3  ;;  %p144_p10 = scmp.eq.s32.totalorder %s719_s19, 1 }
  0x12   : > { %p1186_p9 = por %p138_p6, %p59_p1  ;;  %p721_p12 = scmp.ge.s32.totalorder %s1109_s17, 2 }
  0x13   : > { %s1191_s26 = scalar_select %p50_p7, %s1097_s14, %s52_s21  }
  0x14   : > { %p1193_p11 = por %p144_p10, %p65_p3  ;;  %p908_p13 = scmp.lt.s32.totalorder %s1109_s17, 2 }
  0x15   : > { %s1200_s28 = sand.u32 1, %s1097_s14   ;;  %s801_s30 = sshll.u32 %s1105_s16, 6 }
  0x16   : > { %s722_s29 = sshll.u32 %s1200_s28, 6  ;;  %s1324_s0 = sld [smem:[#allocation12_spill]] }
  0x17   : > { %s171_s7 = scalar_lea.vmem [#allocation3], %s722_s29  ;;  %p1209_p0 = pnand %p908_p13, %p1176_p4 }
  0x18   : > { %s182_s8 = sshll.u32 %s171_s7, 4  ;;  %p728_p1 = scmp.ge.s32.totalorder %s1109_s17, 1  ;;  %s183_s8 = int_to_ptr.vmem [resolvable:$true] %s182_s8 }
  0x19   : > { %s168_s11 = scalar_lea.sflag [#allocation4], %s1200_s28  ;;  %s1111_s18 = smov 64  }
  0x1a   : > { %s1112_s19 = smov 4   ;;  %p212_p2 = scmp.lt.s32.totalorder %s1109_s17, 3 }
  0x1b   : > { %s201_s4 = scalar_lea.hbm %s1316_s1, %s801_s30  ;;  %s196_s22 = scalar_lea.vmem [#allocation6], %s722_s29 }
  0x1c   : > { %s179_s6 = scalar_lea.hbm %s1324_s0, %s801_s30  ;;  %p213_p3 = pnand %p728_p1, %p212_p2 }
  0x1d   : > { %s180_s9 = sshll.u32 %s179_s6, 4  ;;  %s202_s5 = sshll.u32 %s201_s4, 4  ;;  %s181_s9 = int_to_ptr.hbm [resolvable:$true] %s180_s9  ;;  %s203_s5 = int_to_ptr.hbm [resolvable:$true] %s202_s5 }
  0x1e   : > { %900 = dma.hbm_to_vmem [thread:$0]  (!%p1209_p0), %s181_s9, 1024, %s183_s8, %s168_s11, %s1111_s18, %s1111_s18, %s1112_s19  }
  0x1f   : > { %s204_s6 = sshll.u32 %s196_s22, 4  ;;  %s193_s7 = scalar_lea.sflag [#allocation7], %s1200_s28  ;;  %s205_s6 = int_to_ptr.vmem [resolvable:$true] %s204_s6 }
  0x20   : > { %903 = dma.hbm_to_vmem [thread:$0]  (!%p1209_p0), %s203_s5, 1024, %s205_s6, %s193_s7, %s1111_s18, %s1111_s18, %s1112_s19  }
  0x21   : > { %216 = sbr.rel (%p213_p3) target bundleno = 239 (0xef), region = 32  ;;  %s1225_s0 = sand.u32 (!%p213_p3), 1, %s1093_s13  }
  0x22   : > { %s1228_s8 = sshll.u32 (!%p213_p3), %s1225_s0, 6  ;;  %s219_s30 = scalar_lea.sflag (!%p213_p3), [#allocation4], %s1225_s0 }
  0x23   : > { %s1232_s9 = scalar_lea.vmem (!%p213_p3), [#allocation3], %s1228_s8 }
  0x26   : > { %1076 = dma.done.wait (%p1182_p8), %s219_s30, 1024  }
  0x27   : > { %1078 = vsyncadd (%p1182_p8), %s219_s30, 4294966272  ;;  %s229_s28 = scalar_lea.sflag [#allocation7], %s1225_s0  ;;  %s1240_s29 = scalar_lea.vmem [#allocation6], %s1228_s8 }
  0x28   : > { %1080 = dma.done.wait (%p1182_p8), %s229_s28, 1024  }
  0x29   : > { %1082 = vsyncadd (%p1182_p8), %s229_s28, 4294966272  ;;  %v810_v0 = vld [vmem:[%s1240_s29 + $0x38] sm:$0xff]  ;;  %v809_v1 = vld [vmem:[%s1240_s29 + $0x30] sm:$0xff]  ;;  %s1266_s11 = scalar_lea.vmem [#allocation8], %s1228_s8  ;;  %s819_s18 = sshll.u32 %s1101_s15, 6 }
  0x2a   : > { %432 = vmatpush.bf16.msra.mxu0 %v810_v0  ;;  %867 = vmatpush.bf16.msra.mxu1 %v810_v0  ;;  %v808_v2 = vld [vmem:[%s1240_s29 + $0x28] sm:$0xff]  ;;  %v807_v3 = vld [vmem:[%s1240_s29 + $0x20] sm:$0xff]  ;;  %v806_v4 = vld [vmem:[%s1240_s29 + $0x18] sm:$0xff]  ;;  %s598_s23 = scalar_lea.hbm %s1318_s3, %s819_s18  ;;  %s599_s4 = sshll.u32 %s1266_s11, 4  ;;  %s600_s4 = int_to_ptr.vmem [resolvable:$true] %s599_s4 }
  0x2b   : > { %868 = vmatpush.bf16.msra.mxu2 %v810_v0  ;;  %869 = vmatpush.bf16.msra.mxu3 %v810_v0  ;;  %v805_v5 = vld [vmem:[%s1240_s29 + $0x10] sm:$0xff]  ;;  %v804_v6 = vld [vmem:[%s1240_s29 + $0x8] sm:$0xff]  ;;  %v803_v7 = vld [vmem:[%s1240_s29] sm:$0xff]  ;;  %s601_s5 = sshll.u32 %s598_s23, 4  ;;  %s585_s15 = scalar_lea.sflag [#allocation5], %s1225_s0  ;;  %s602_s5 = int_to_ptr.hbm [resolvable:$true] %s601_s5 }
  0x2c   : > { %v811_v8 = vld [vmem:[%s1232_s9] sm:$0xff]  ;;  %v813_v9 = vld [vmem:[%s1232_s9 + $0x10] sm:$0xff]  ;;  %v812_v12 = vld [vmem:[%s1232_s9 + $0x8] sm:$0xff]  ;;  %s1037_s22 = sshra.s32 %s602_s5, 4  ;;  %s1043_s30 = scalar_lea.hbm %s1318_s3, 128  ;;  %s1038_s22 = int_to_ptr.hbm [resolvable:$true] %s1037_s22 }
  0x2d   : > { %v815_v10 = vld [vmem:[%s1232_s9 + $0x20] sm:$0xff]  ;;  %v817_v11 = vld [vmem:[%s1232_s9 + $0x30] sm:$0xff]  ;;  %v814_v13 = vld [vmem:[%s1232_s9 + $0x18] sm:$0xff]  ;;  %s1039_s6 = scalar_lea.hbm %s1038_s22, 64  ;;  %p1044_p7 = scmp.lt.s32.totalorder %s1038_s22, %s1318_s3 }
  0x2e   : > { %433 = vmatpush.bf16.msra.mxu0 %v809_v1  ;;  %870 = vmatpush.bf16.msra.mxu1 %v809_v1  ;;  %v816_v14 = vld [vmem:[%s1232_s9 + $0x28] sm:$0xff]  ;;  %v818_v15 = vld [vmem:[%s1232_s9 + $0x38] sm:$0xff]  ;;  %v962_v18 = vld [vmem:[%s1317_s2] ss:$0 sm:$0xff]  ;;  %p1040_p4 = scmp.ne.s32.totalorder %s1038_s22, %s1039_s6  ;;  %p1045_p8 = scmp.lt.s32.totalorder %s1043_s30, %s1039_s6 }
  0x2f   : > { %871 = vmatpush.bf16.msra.mxu2 %v809_v1  ;;  %872 = vmatpush.bf16.msra.mxu3 %v809_v1 }
  0x30   : > { %p1041_p5 = pnand %p1040_p4, %p1186_p9  ;;  %p1046_p10 = por %p1045_p8, %p1044_p7 }
  0x32   : > { %434 = vmatpush.bf16.msra.mxu0 %v808_v2  ;;  %873 = vmatpush.bf16.msra.mxu1 %v808_v2  ;;  %p1042_p6 = pneg %p1041_p5 }
  0x33   : > { %874 = vmatpush.bf16.msra.mxu2 %v808_v2  ;;  %875 = vmatpush.bf16.msra.mxu3 %v808_v2 }
  0x34   : > { %p1047_p13 = pnand %p1046_p10, %p1042_p6 }
  0x36   : > { %435 = vmatpush.bf16.msra.mxu0 %v807_v3  ;;  %876 = vmatpush.bf16.msra.mxu1 %v807_v3 }
  0x37   : > { %877 = vmatpush.bf16.msra.mxu2 %v807_v3  ;;  %878 = vmatpush.bf16.msra.mxu3 %v807_v3 }
  0x3a   : > { %436 = vmatpush.bf16.msra.mxu0 %v806_v4  ;;  %879 = vmatpush.bf16.msra.mxu1 %v806_v4 }
  0x3b   : > { %880 = vmatpush.bf16.msra.mxu2 %v806_v4  ;;  %881 = vmatpush.bf16.msra.mxu3 %v806_v4 }
  0x3e   : > { %437 = vmatpush.bf16.msra.mxu0 %v805_v5  ;;  %882 = vmatpush.bf16.msra.mxu1 %v805_v5 }
  0x3f   : > { %883 = vmatpush.bf16.msra.mxu2 %v805_v5  ;;  %884 = vmatpush.bf16.msra.mxu3 %v805_v5 }
  0x42   : > { %438 = vmatpush.bf16.msra.mxu0 %v804_v6  ;;  %885 = vmatpush.bf16.msra.mxu1 %v804_v6 }
  0x43   : > { %886 = vmatpush.bf16.msra.mxu2 %v804_v6  ;;  %887 = vmatpush.bf16.msra.mxu3 %v804_v6 }
  0x46   : > { %439 = vmatpush.bf16.msra.mxu0 %v803_v7  ;;  %888 = vmatpush.bf16.msra.mxu1 %v803_v7 }
  0x47   : > { %889 = vmatpush.bf16.msra.mxu2 %v803_v7  ;;  %890 = vmatpush.bf16.msra.mxu3 %v803_v7 }
  0x49   : > { %440 = vmatmul.bf16.vlgmr.msra.gmra.mxu0 %v811_v8  ;;  %450 = vmatmul.bf16.vlgmr.msra.gmra.mxu1 %v813_v9 }
  0x4a   : > { %460 = vmatmul.bf16.vlgmr.msra.gmra.mxu2 %v815_v10  ;;  %470 = vmatmul.bf16.vlgmr.msra.gmra.mxu3 %v817_v11 }
  0x59   : > { %445 = vmatmul.bf16.gmra.mxu0 %v812_v12  ;;  %455 = vmatmul.bf16.gmra.mxu1 %v814_v13 }
  0x5a   : > { %465 = vmatmul.bf16.gmra.mxu2 %v816_v14  ;;  %475 = vmatmul.bf16.gmra.mxu3 %v818_v15 }
  0xc6   : > { %v441_v16 = vpop.f32.mrf.mxu0  ;;  %v451_v17 = vpop.f32.mrf.mxu1 }
  0xc7   : > { %v536_v23 = vadd.f32 %v962_v18, %v441_v16  ;;  %v540_v24 = vadd.f32 %v962_v18, %v451_v17 }
  0xcd   : > { %v461_v19 = vpop.f32.mrf.mxu2  ;;  %v471_v20 = vpop.f32.mrf.mxu3 }
  0xce   : > { %v443_v21 = vpop.f32.mrf.mxu0  ;;  %v453_v22 = vpop.f32.mrf.mxu1  ;;  %v544_v31 = vadd.f32 %v962_v18, %v461_v19  ;;  %v548_v32 = vadd.f32 %v962_v18, %v471_v20 }
  0xcf   : > { %v537_v25 = vadd.f32 %v962_v18, %v443_v21  ;;  %v541_v26 = vadd.f32 %v962_v18, %v453_v22 }
  0xd1   : > { %v823_v27 = vpack.c.bf16 %v537_v25, %v536_v23  ;;  %v833_v28 = vpack.c.bf16 %v541_v26, %v540_v24 }
  0xd3   : > { %824 = vst [vmem:[%s1266_s11] sm:$0xff] %v823_v27  }
  0xd4   : > { %861 = vst [vmem:[%s1266_s11 + $0x10] sm:$0xff] %v833_v28  }
  0xd5   : > { %v463_v29 = vpop.f32.mrf.mxu2  ;;  %v473_v30 = vpop.f32.mrf.mxu3 }
  0xd6   : > { %v545_v33 = vadd.f32 %v962_v18, %v463_v29  ;;  %v549_v34 = vadd.f32 %v962_v18, %v473_v30  ;;  %v446_v35 = vpop.f32.mrf.mxu0  ;;  %v456_v36 = vpop.f32.mrf.mxu1 }
  0xd7   : > { %v538_v43 = vadd.f32 %v962_v18, %v446_v35  ;;  %v542_v44 = vadd.f32 %v962_v18, %v456_v36 }
  0xd8   : > { %v843_v37 = vpack.c.bf16 %v545_v33, %v544_v31  ;;  %v853_v38 = vpack.c.bf16 %v549_v34, %v548_v32 }
  0xda   : > { %863 = vst [vmem:[%s1266_s11 + $0x20] sm:$0xff] %v843_v37  }
  0xdb   : > { %865 = vst [vmem:[%s1266_s11 + $0x30] sm:$0xff] %v853_v38  }
  0xdd   : > { %v466_v39 = vpop.f32.mrf.mxu2  ;;  %v476_v40 = vpop.f32.mrf.mxu3 }
  0xde   : > { %v448_v41 = vpop.f32.mrf.mxu0  ;;  %v458_v42 = vpop.f32.mrf.mxu1  ;;  %v546_v51 = vadd.f32 %v962_v18, %v466_v39  ;;  %v550_v52 = vadd.f32 %v962_v18, %v476_v40 }
  0xdf   : > { %v539_v45 = vadd.f32 %v962_v18, %v448_v41  ;;  %v543_v46 = vadd.f32 %v962_v18, %v458_v42 }
  0xe1   : > { %v828_v47 = vpack.c.bf16 %v539_v45, %v538_v43  ;;  %v838_v48 = vpack.c.bf16 %v543_v46, %v542_v44 }
  0xe3   : > { %860 = vst [vmem:[%s1266_s11 + $0x8] sm:$0xff] %v828_v47  }
  0xe4   : > { %862 = vst [vmem:[%s1266_s11 + $0x18] sm:$0xff] %v838_v48  }
  0xe5   : > { %v468_v49 = vpop.f32.mrf.mxu2  ;;  %v478_v50 = vpop.f32.mrf.mxu3 }
  0xe6   : > { %v547_v53 = vadd.f32 %v962_v18, %v468_v49  ;;  %v551_v54 = vadd.f32 %v962_v18, %v478_v50 }
  0xe8   : > { %v848_v55 = vpack.c.bf16 %v547_v53, %v546_v51  ;;  %v858_v56 = vpack.c.bf16 %v551_v54, %v550_v52 }
  0xea   : > { %864 = vst [vmem:[%s1266_s11 + $0x28] sm:$0xff] %v848_v55  }
  0xeb   : > { %866 = vst [vmem:[%s1266_s11 + $0x38] sm:$0xff] %v858_v56  }
  0xec   : > { %1050 = shalt.err (!%p1047_p13)
}
  0xed   : > { %s1113_s0 = smov 64   ;;  %s1114_s29 = smov 4  }
  0xee   : > { %895 = dma.vmem_to_hbm [thread:$0]  (%p1186_p9), %s600_s4, 1024, %s602_s5, %s585_s15, %s1113_s0, %s1113_s0, %s1114_s29  }
  0xef PF: > { %s616_s24 = sand.u32 1, %s1089_s12   ;;  %p905_p0 = pnand %p721_p12, %p1193_p11 }
  0xf0   : > { %s617_s10 = scalar_lea.sflag [#allocation5], %s616_s24 }
  0xf1   : > { %p906_p1 = pneg %p905_p0 }
  0xf3   : > { %1084 = dma.done.wait (%p906_p1), %s617_s10, 1024  }
  0xf4   : > { %1086 = vsyncadd (%p906_p1), %s617_s10, 4294966272  ;;  %s22_s17 = sadd.s32 1, %s1109_s17   ;;  %s1326_s12 = smov %s1093_s13 }
  0xf5   : > { %p19_p2 = scmp.ge.s32.totalorder %s22_s17, 4   ;;  %s1327_s13 = smov %s1097_s14 }
  0xf6   : > { %s1328_s14 = smov %s1191_s26  ;;  %s1329_s15 = smov %s1105_s16 }
  0xf7   : > { %s1330_s16 = smov %s1332_s20  ;;  %21 = sbr.rel (!%p19_p2) target bundleno = 10 (0xa), region = 99 }
  0xfc   :  { %623 = vsyncpa [#allocation4], 1 }
  0xfd   :  { %625 = vsyncpa [#allocation4 + $0x1], 1 }
  0xfe   :  { %626 = vsyncpa [#allocation7], 1 }
  0xff   :  { %628 = vsyncpa [#allocation7 + $0x1], 1 }
 0x100   :  { %629 = vsyncpa [#allocation5], 1 }
 0x101   :  { %631 = vsyncpa [#allocation5 + $0x1], 1 }

</bundles_post_ra>
